<compile_context>
chip_gen: v7x
topology: tpu7x:2x2x1
jax: 0.10.0
libtpu: 0.0.40
codegen_flags: <defaults>
</compile_context>

<pallas_src>
import functools

import jax
import jax.numpy as jnp
from jax.experimental import pallas as pl
from jax.experimental.pallas import tpu as pltpu


# 48 MiB: below v7x's 64 MiB physical VMEM per TC, generous on v5e/v6e (128 MiB).
_VMEM_LIMIT = 48 * 1024 * 1024


# ----------------------------------------------------------------------------
# Tile-size helpers (adapt to small test shapes while staying (8,128)-legal).
# ----------------------------------------------------------------------------
def _pick_row_tile(m, target=256):
    """Row (sublane) tile: multiple of 8 (or full dim), preferring >=2 steps."""
    if m % target == 0:
        return target
    if m % 8 == 0 and m >= 16:
        t = min(target, m // 2)
        t = max(8, (t // 8) * 8)
        while t >= 8:
            if m % t == 0:
                return t
            t -= 8
    return m


def _pick_col_tile(n, target=512):
    """Lane tile: multiple of 128, or the full dimension."""
    if n % target == 0:
        return target
    t = (target // 128) * 128
    while t >= 128:
        if n % t == 0:
            return t
        t -= 128
    return n


def _pick_leading_tile(n, target=8):
    """Divisor of n, <= target, preferring >=2 grid steps (v7x megacore)."""
    if n <= 1:
        return max(n, 1)
    t = min(target, max(1, n // 2))
    while t > 1 and n % t != 0:
        t -= 1
    return max(t, 1)


# ----------------------------------------------------------------------------
# Kernel 1: QKV projection — one pass over x, three bf16 outputs.
#           q = x@Wq+bq, k = x@Wk+bk, v = x@Wv+bv  (bf16 in, f32 accumulate)
# ----------------------------------------------------------------------------
def _qkv_proj_kernel(x_ref, wq_ref, wk_ref, wv_ref, bq_ref, bk_ref, bv_ref,
                     oq_ref, ok_ref, ov_ref, accq, acck, accv):
    @pl.when(pl.program_id(2) == 0)
    def _():
        accq[...] = jnp.zeros_like(accq)
        acck[...] = jnp.zeros_like(acck)
        accv[...] = jnp.zeros_like(accv)

    x = x_ref[...].astype(jnp.bfloat16)          # activations cast in-kernel
    accq[...] += jnp.dot(x, wq_ref[...], preferred_element_type=jnp.float32)
    acck[...] += jnp.dot(x, wk_ref[...], preferred_element_type=jnp.float32)
    accv[...] += jnp.dot(x, wv_ref[...], preferred_element_type=jnp.float32)

    @pl.when(pl.program_id(2) == pl.num_programs(2) - 1)
    def _():
        oq_ref[...] = (accq[...] + bq_ref[...]).astype(oq_ref.dtype)
        ok_ref[...] = (acck[...] + bk_ref[...]).astype(ok_ref.dtype)
        ov_ref[...] = (accv[...] + bv_ref[...]).astype(ov_ref.dtype)


def qkv_projection(x2d, wq, wk, wv, bq, bk, bv):
    M, K = x2d.shape
    N = wq.shape[1]
    tm = _pick_row_tile(M, target=256)
    tn = _pick_col_tile(N, target=256)
    tk = _pick_col_tile(K, target=512)
    grid = (M // tm, N // tn, K // tk)

    x_spec = pl.BlockSpec((tm, tk), lambda i, j, k: (i, k))
    w_spec = pl.BlockSpec((tk, tn), lambda i, j, k: (k, j))
    b_spec = pl.BlockSpec((1, tn), lambda i, j, k: (0, j))
    o_spec = pl.BlockSpec((tm, tn), lambda i, j, k: (i, j))
    out_sds = jax.ShapeDtypeStruct((M, N), jnp.bfloat16)   # bf16 intermediates

    return pl.pallas_call(
        _qkv_proj_kernel,
        out_shape=(out_sds, out_sds, out_sds),
        grid_spec=pltpu.PrefetchScalarGridSpec(
            num_scalar_prefetch=0,
            grid=grid,
            in_specs=[x_spec, w_spec, w_spec, w_spec, b_spec, b_spec, b_spec],
            out_specs=(o_spec, o_spec, o_spec),
            scratch_shapes=[pltpu.VMEM((tm, tn), jnp.float32)] * 3,
        ),
        compiler_params=pltpu.CompilerParams(
            dimension_semantics=("parallel", "parallel", "arbitrary"),
            vmem_limit_bytes=_VMEM_LIMIT,
        ),
    )(x2d, wq, wk, wv, bq, bk, bv)


# ----------------------------------------------------------------------------
# Kernel 2: flash-style scaled dot-product attention.
#           grid = (BH tiles [parallel], q tiles [parallel], kv tiles [arbitrary])
#           online-softmax scratch (m, l, acc); scale folded into q.
# ----------------------------------------------------------------------------
def _flash_attn_kernel(q_ref, k_ref, v_ref, o_ref, m_sc, l_sc, acc_sc, *, scale):
    ki = pl.program_id(2)

    @pl.when(ki == 0)
    def _():
        m_sc[...] = jnp.full_like(m_sc, -jnp.inf)
        l_sc[...] = jnp.zeros_like(l_sc)
        acc_sc[...] = jnp.zeros_like(acc_sc)

    # Fold softmax scale into q: tq*dh multiplies instead of tq*tk on scores.
    q = (q_ref[...].astype(jnp.float32) * scale).astype(jnp.bfloat16)  # (bt,tq,dh)
    k = k_ref[...]                                                      # bf16

    # (bt, tq, tk): batch over leading axis, contract last dims -> no k.T relayout.
    s = jax.lax.dot_general(
        q, k, (((2,), (2,)), ((0,), (0,))),
        preferred_element_type=jnp.float32)

    m_prev = m_sc[...]
    m_new = jnp.maximum(m_prev, jnp.max(s, axis=-1, keepdims=True))
    alpha = jnp.exp(m_prev - m_new)
    p = jnp.exp(s - m_new)
    l_sc[...] = alpha * l_sc[...] + jnp.sum(p, axis=-1, keepdims=True)
    acc_sc[...] = alpha * acc_sc[...] + jax.lax.dot_general(
        p.astype(jnp.bfloat16), v_ref[...],
        (((2,), (1,)), ((0,), (0,))),
        preferred_element_type=jnp.float32)                             # (bt,tq,dh)
    m_sc[...] = m_new

    @pl.when(ki == pl.num_programs(2) - 1)
    def _():
        o_ref[...] = (acc_sc[...] *
                      pl.reciprocal(l_sc[...], approx=True)).astype(o_ref.dtype)


def flash_attention(q, k, v, scale):
    BH, S, dh = q.shape
    bt = _pick_leading_tile(BH, target=8)
    tq = _pick_row_tile(S, target=256)
    tk = _pick_row_tile(S, target=256)

    kern = functools.partial(_flash_attn_kernel, scale=scale)
    q_spec = pl.BlockSpec((bt, tq, dh), lambda b, qi, ki: (b, qi, 0))
    kv_spec = pl.BlockSpec((bt, tk, dh), lambda b, qi, ki: (b, ki, 0))
    o_spec = pl.BlockSpec((bt, tq, dh), lambda b, qi, ki: (b, qi, 0))

    return pl.pallas_call(
        kern,
        out_shape=jax.ShapeDtypeStruct((BH, S, dh), jnp.bfloat16),
        grid_spec=pltpu.PrefetchScalarGridSpec(
            num_scalar_prefetch=0,
            grid=(BH // bt, S // tq, S // tk),
            in_specs=[q_spec, kv_spec, kv_spec],
            out_specs=o_spec,
            scratch_shapes=[
                pltpu.VMEM((bt, tq, 1), jnp.float32),    # running max m
                pltpu.VMEM((bt, tq, 1), jnp.float32),    # running denom l
                pltpu.VMEM((bt, tq, dh), jnp.float32),   # running context acc
            ],
        ),
        compiler_params=pltpu.CompilerParams(
            dimension_semantics=("parallel", "parallel", "arbitrary"),
            vmem_limit_bytes=_VMEM_LIMIT,
        ),
    )(q, k, v)


# ----------------------------------------------------------------------------
# Kernel 3: output projection + residual + LayerNorm, Wo tiled along K.
#           out = LN(ctx @ Wo + bo + x)
# ----------------------------------------------------------------------------
def _out_ln_kernel(ctx_ref, x_ref, w_ref, b_ref, g_ref, beta_ref, o_ref,
                   acc_ref, *, eps):
    k = pl.program_id(1)

    @pl.when(k == 0)
    def _():
        acc_ref[...] = jnp.zeros_like(acc_ref)

    acc_ref[...] += jnp.dot(ctx_ref[...], w_ref[...],
                            preferred_element_type=jnp.float32)

    @pl.when(k == pl.num_programs(1) - 1)
    def _():
        out = acc_ref[...] + b_ref[...] + x_ref[...]
        mean = jnp.mean(out, axis=-1, keepdims=True)
        var = jnp.mean((out - mean) ** 2, axis=-1, keepdims=True)  # biased (torch)
        inv = jax.lax.rsqrt(var + eps)
        o_ref[...] = ((out - mean) * inv * g_ref[...] + beta_ref[...]).astype(o_ref.dtype)


def out_proj_residual_layernorm(ctx2d, x2d, w_o, b_o, gamma, beta, eps=1e-5):
    M, D = x2d.shape
    tm = _pick_row_tile(M, target=256)
    tkc = _pick_col_tile(D, target=512)   # contraction tile: Wo block is (tkc, D)
    kern = functools.partial(_out_ln_kernel, eps=eps)

    return pl.pallas_call(
        kern,
        out_shape=jax.ShapeDtypeStruct((M, D), jnp.float32),
        grid_spec=pltpu.PrefetchScalarGridSpec(
            num_scalar_prefetch=0,
            grid=(M // tm, D // tkc),
            in_specs=[
                pl.BlockSpec((tm, tkc), lambda i, k: (i, k)),   # ctx (bf16)
                pl.BlockSpec((tm, D), lambda i, k: (i, 0)),     # residual x (f32)
                pl.BlockSpec((tkc, D), lambda i, k: (k, 0)),    # Wo K-tile (bf16)
                pl.BlockSpec((1, D), lambda i, k: (0, 0)),
                pl.BlockSpec((1, D), lambda i, k: (0, 0)),
                pl.BlockSpec((1, D), lambda i, k: (0, 0)),
            ],
            out_specs=pl.BlockSpec((tm, D), lambda i, k: (i, 0)),
            scratch_shapes=[pltpu.VMEM((tm, D), jnp.float32)],
        ),
        compiler_params=pltpu.CompilerParams(
            dimension_semantics=("parallel", "arbitrary"),
            vmem_limit_bytes=_VMEM_LIMIT,
        ),
    )(ctx2d, x2d, w_o, b_o, gamma, beta)


# ----------------------------------------------------------------------------
# Parameters & full forward
# ----------------------------------------------------------------------------
def init_params(key, dim_model):
    ks = jax.random.split(key, 8)
    scale = 1.0 / jnp.sqrt(dim_model)

    def lin(kw, kb):
        w = jax.random.normal(kw, (dim_model, dim_model), jnp.float32) * scale
        b = jax.random.normal(kb, (1, dim_model), jnp.float32) * scale
        return w, b

    wq, bq = lin(ks[0], ks[1])
    wk, bk = lin(ks[2], ks[3])
    wv, bv = lin(ks[4], ks[5])
    wo, bo = lin(ks[6], ks[7])
    return {
        # weights stored bf16 (MXU-native, halves weight HBM/VMEM traffic)
        "wq": wq.astype(jnp.bfloat16), "bq": bq,
        "wk": wk.astype(jnp.bfloat16), "bk": bk,
        "wv": wv.astype(jnp.bfloat16), "bv": bv,
        "wo": wo.astype(jnp.bfloat16), "bo": bo,
        "ln_gamma": jnp.ones((1, dim_model), jnp.float32),
        "ln_beta": jnp.zeros((1, dim_model), jnp.float32),
    }


def multi_head_attention_forward(params, x, num_head):
    B, S, D = x.shape
    dim_head = D // num_head

    x2d = x.reshape(B * S, D)                      # row-major flatten (free)
    q2d, k2d, v2d = qkv_projection(
        x2d, params["wq"], params["wk"], params["wv"],
        params["bq"], params["bk"], params["bv"])  # three bf16 (B*S, D)

    # Reproduce torch's .view(batch*num_head, -1, dim_head) exactly (row-major).
    q = q2d.reshape(B * num_head, -1, dim_head)
    k = k2d.reshape(B * num_head, -1, dim_head)
    v = v2d.reshape(B * num_head, -1, dim_head)

    scale = float(dim_head) ** (-0.5)
    ctx = flash_attention(q, k, v, scale)          # (B*H, S, dh) bf16

    # torch: context.view(batch, -1, dim_head*num_head) -> (B, S, D); flat rows.
    ctx2d = ctx.reshape(B * S, D)

    # TODO(synk): nn.Dropout(0.0) is the identity in eval / p=0, so it is omitted.
    out2d = out_proj_residual_layernorm(
        ctx2d, x2d, params["wo"], params["bo"],
        params["ln_gamma"], params["ln_beta"])
    return out2d.reshape(B, S, D)


# ----------------------------------------------------------------------------
# Pure-JAX reference with the same precision policy (bf16 matmul inputs /
# intermediates, f32 accumulation, f32 softmax + LayerNorm) for a tight check.
# ----------------------------------------------------------------------------
def reference_forward(params, x, num_head):
    B, S, D = x.shape
    dh = D // num_head
    x2d = x.reshape(B * S, D)
    xb = x2d.astype(jnp.bfloat16)
    q = (jnp.dot(xb, params["wq"], preferred_element_type=jnp.float32)
         + params["bq"]).astype(jnp.bfloat16)
    k = (jnp.dot(xb, params["wk"], preferred_element_type=jnp.float32)
         + params["bk"]).astype(jnp.bfloat16)
    v = (jnp.dot(xb, params["wv"], preferred_element_type=jnp.float32)
         + params["bv"]).astype(jnp.bfloat16)
    q = q.reshape(B * num_head, -1, dh)
    k = k.reshape(B * num_head, -1, dh)
    v = v.reshape(B * num_head, -1, dh)
    scale = float(dh) ** (-0.5)
    qs = (q.astype(jnp.float32) * scale).astype(jnp.bfloat16)
    s = jnp.einsum("bqd,bkd->bqk", qs, k, preferred_element_type=jnp.float32)
    p = jax.nn.softmax(s, axis=-1)
    ctx = jnp.einsum("bqk,bkd->bqd", p.astype(jnp.bfloat16), v,
                     preferred_element_type=jnp.float32).astype(jnp.bfloat16)
    ctx2d = ctx.reshape(B * S, D)
    out = (jnp.dot(ctx2d, params["wo"], preferred_element_type=jnp.float32)
           + params["bo"] + x2d)
    mean = jnp.mean(out, axis=-1, keepdims=True)
    var = jnp.mean((out - mean) ** 2, axis=-1, keepdims=True)
    out = (out - mean) / jnp.sqrt(var + 1e-5) * params["ln_gamma"] + params["ln_beta"]
    return out.reshape(B, S, D)


if __name__ == "__main__":
    B, S, dim_model, num_head = 2, 8, 32, 4

    key = jax.random.PRNGKey(0)
    k_x, k_p = jax.random.split(key)
    x = jax.random.normal(k_x, (B, S, dim_model), jnp.float32)
    params = init_params(k_p, dim_model)

    out = multi_head_attention_forward(params, x, num_head)
    out = jax.block_until_ready(out)

    ref = reference_forward(params, x, num_head)
    assert out.shape == (B, S, dim_model)
    assert jnp.allclose(out, ref, rtol=2e-2, atol=2e-2), "mismatch vs reference"

    print("KERNEL_OK")
</pallas_src>

<mosaic_0001>
module attributes {stable_mosaic.version = 11 : i64} {
  func.func @_qkv_proj_kernel(%arg0: i32, %arg1: i32, %arg2: i32, %arg3: memref<8x32xf32, #tpu.memory_space<vmem>>, %arg4: memref<32x32xbf16, #tpu.memory_space<vmem>>, %arg5: memref<32x32xbf16, #tpu.memory_space<vmem>>, %arg6: memref<32x32xbf16, #tpu.memory_space<vmem>>, %arg7: memref<1x32xf32, #tpu.memory_space<vmem>>, %arg8: memref<1x32xf32, #tpu.memory_space<vmem>>, %arg9: memref<1x32xf32, #tpu.memory_space<vmem>>, %arg10: memref<8x32xbf16, #tpu.memory_space<vmem>>, %arg11: memref<8x32xbf16, #tpu.memory_space<vmem>>, %arg12: memref<8x32xbf16, #tpu.memory_space<vmem>>, %arg13: memref<8x32xf32, #tpu.memory_space<vmem>>, %arg14: memref<8x32xf32, #tpu.memory_space<vmem>>, %arg15: memref<8x32xf32, #tpu.memory_space<vmem>>) attributes {dimension_semantics = [#tpu.dimension_semantics<parallel>, #tpu.dimension_semantics<parallel>, #tpu.dimension_semantics<arbitrary>], iteration_bounds = array<i64: 2, 1, 1>, scalar_prefetch = 0 : i64, scratch_operands = 3 : i64, tpu.core_type = #tpu.core_type<tc>, window_params = [{transform_indices = @transform_0, window_bounds = array<i64: 8, 32>}, {transform_indices = @transform_1, window_bounds = array<i64: 32, 32>}, {transform_indices = @transform_2, window_bounds = array<i64: 32, 32>}, {transform_indices = @transform_3, window_bounds = array<i64: 32, 32>}, {transform_indices = @transform_4, window_bounds = array<i64: 1, 32>}, {transform_indices = @transform_5, window_bounds = array<i64: 1, 32>}, {transform_indices = @transform_6, window_bounds = array<i64: 1, 32>}, {transform_indices = @transform_7, window_bounds = array<i64: 8, 32>}, {transform_indices = @transform_8, window_bounds = array<i64: 8, 32>}, {transform_indices = @transform_9, window_bounds = array<i64: 8, 32>}]} {
    %c0_i32 = arith.constant 0 : i32
    %0 = arith.cmpi eq, %arg2, %c0_i32 : i32
    %1 = arith.extui %0 : i1 to i32
    %c0_i32_0 = arith.constant 0 : i32
    %2 = arith.cmpi ne, %1, %c0_i32_0 : i32
    scf.if %2 {
      %cst_24 = arith.constant 0.000000e+00 : f32
      %23 = vector.broadcast %cst_24 : f32 to vector<8x32xf32>
      %c0_25 = arith.constant 0 : index
      %c0_26 = arith.constant 0 : index
      %24 = vector.load %arg13[%c0_25, %c0_26] : memref<8x32xf32, #tpu.memory_space<vmem>>, vector<8x32xf32>
      tpu.vector_store %arg13[%c0_25, %c0_26], %23 {strides = array<i32>} : memref<8x32xf32, #tpu.memory_space<vmem>>, vector<8x32xf32>,
      %cst_27 = arith.constant 0.000000e+00 : f32
      %25 = vector.broadcast %cst_27 : f32 to vector<8x32xf32>
      %c0_28 = arith.constant 0 : index
      %c0_29 = arith.constant 0 : index
      %26 = vector.load %arg14[%c0_28, %c0_29] : memref<8x32xf32, #tpu.memory_space<vmem>>, vector<8x32xf32>
      tpu.vector_store %arg14[%c0_28, %c0_29], %25 {strides = array<i32>} : memref<8x32xf32, #tpu.memory_space<vmem>>, vector<8x32xf32>,
      %cst_30 = arith.constant 0.000000e+00 : f32
      %27 = vector.broadcast %cst_30 : f32 to vector<8x32xf32>
      %c0_31 = arith.constant 0 : index
      %c0_32 = arith.constant 0 : index
      %28 = vector.load %arg15[%c0_31, %c0_32] : memref<8x32xf32, #tpu.memory_space<vmem>>, vector<8x32xf32>
      tpu.vector_store %arg15[%c0_31, %c0_32], %27 {strides = array<i32>} : memref<8x32xf32, #tpu.memory_space<vmem>>, vector<8x32xf32>,
    } else {
    }
    %c0 = arith.constant 0 : index
    %c0_1 = arith.constant 0 : index
    %3 = vector.load %arg3[%c0, %c0_1] : memref<8x32xf32, #tpu.memory_space<vmem>>, vector<8x32xf32>
    %4 = arith.truncf %3 : vector<8x32xf32> to vector<8x32xbf16>
    %c0_2 = arith.constant 0 : index
    %c0_3 = arith.constant 0 : index
    %5 = vector.load %arg13[%c0_2, %c0_3] : memref<8x32xf32, #tpu.memory_space<vmem>>, vector<8x32xf32>
    %c0_4 = arith.constant 0 : index
    %c0_5 = arith.constant 0 : index
    %6 = vector.load %arg4[%c0_4, %c0_5] : memref<32x32xbf16, #tpu.memory_space<vmem>>, vector<32x32xbf16>
    %cst = arith.constant dense<0.000000e+00> : vector<8x32xf32>
    %7 = tpu.matmul %4, %6, %cst {dimension_numbers = #tpu.dot_dimension_numbers<[1], [0], [0], [1], [0, 0, 1, 1], [], []>} : vector<8x32xbf16>, vector<32x32xbf16>, vector<8x32xf32> -> vector<8x32xf32>
    %8 = arith.addf %5, %7 : vector<8x32xf32>
    %c0_6 = arith.constant 0 : index
    %c0_7 = arith.constant 0 : index
    %9 = vector.load %arg13[%c0_6, %c0_7] : memref<8x32xf32, #tpu.memory_space<vmem>>, vector<8x32xf32>
    tpu.vector_store %arg13[%c0_6, %c0_7], %8 {strides = array<i32>} : memref<8x32xf32, #tpu.memory_space<vmem>>, vector<8x32xf32>,
    %c0_8 = arith.constant 0 : index
    %c0_9 = arith.constant 0 : index
    %10 = vector.load %arg14[%c0_8, %c0_9] : memref<8x32xf32, #tpu.memory_space<vmem>>, vector<8x32xf32>
    %c0_10 = arith.constant 0 : index
    %c0_11 = arith.constant 0 : index
    %11 = vector.load %arg5[%c0_10, %c0_11] : memref<32x32xbf16, #tpu.memory_space<vmem>>, vector<32x32xbf16>
    %cst_12 = arith.constant dense<0.000000e+00> : vector<8x32xf32>
    %12 = tpu.matmul %4, %11, %cst_12 {dimension_numbers = #tpu.dot_dimension_numbers<[1], [0], [0], [1], [0, 0, 1, 1], [], []>} : vector<8x32xbf16>, vector<32x32xbf16>, vector<8x32xf32> -> vector<8x32xf32>
    %13 = arith.addf %10, %12 : vector<8x32xf32>
    %c0_13 = arith.constant 0 : index
    %c0_14 = arith.constant 0 : index
    %14 = vector.load %arg14[%c0_13, %c0_14] : memref<8x32xf32, #tpu.memory_space<vmem>>, vector<8x32xf32>
    tpu.vector_store %arg14[%c0_13, %c0_14], %13 {strides = array<i32>} : memref<8x32xf32, #tpu.memory_space<vmem>>, vector<8x32xf32>,
    %c0_15 = arith.constant 0 : index
    %c0_16 = arith.constant 0 : index
    %15 = vector.load %arg15[%c0_15, %c0_16] : memref<8x32xf32, #tpu.memory_space<vmem>>, vector<8x32xf32>
    %c0_17 = arith.constant 0 : index
    %c0_18 = arith.constant 0 : index
    %16 = vector.load %arg6[%c0_17, %c0_18] : memref<32x32xbf16, #tpu.memory_space<vmem>>, vector<32x32xbf16>
    %cst_19 = arith.constant dense<0.000000e+00> : vector<8x32xf32>
    %17 = tpu.matmul %4, %16, %cst_19 {dimension_numbers = #tpu.dot_dimension_numbers<[1], [0], [0], [1], [0, 0, 1, 1], [], []>} : vector<8x32xbf16>, vector<32x32xbf16>, vector<8x32xf32> -> vector<8x32xf32>
    %18 = arith.addf %15, %17 : vector<8x32xf32>
    %c0_20 = arith.constant 0 : index
    %c0_21 = arith.constant 0 : index
    %19 = vector.load %arg15[%c0_20, %c0_21] : memref<8x32xf32, #tpu.memory_space<vmem>>, vector<8x32xf32>
    tpu.vector_store %arg15[%c0_20, %c0_21], %18 {strides = array<i32>} : memref<8x32xf32, #tpu.memory_space<vmem>>, vector<8x32xf32>,
    %c0_i32_22 = arith.constant 0 : i32
    %20 = arith.cmpi eq, %arg2, %c0_i32_22 : i32
    %21 = arith.extui %20 : i1 to i32
    %c0_i32_23 = arith.constant 0 : i32
    %22 = arith.cmpi ne, %21, %c0_i32_23 : i32
    scf.if %22 {
      %c0_24 = arith.constant 0 : index
      %c0_25 = arith.constant 0 : index
      %23 = vector.load %arg13[%c0_24, %c0_25] : memref<8x32xf32, #tpu.memory_space<vmem>>, vector<8x32xf32>
      %c0_26 = arith.constant 0 : index
      %c0_27 = arith.constant 0 : index
      %24 = vector.load %arg7[%c0_26, %c0_27] : memref<1x32xf32, #tpu.memory_space<vmem>>, vector<1x32xf32>
      %25 = vector.broadcast %24 : vector<1x32xf32> to vector<8x32xf32>
      %26 = arith.addf %23, %25 : vector<8x32xf32>
      %27 = arith.truncf %26 : vector<8x32xf32> to vector<8x32xbf16>
      %c0_28 = arith.constant 0 : index
      %c0_29 = arith.constant 0 : index
      %28 = vector.load %arg10[%c0_28, %c0_29] : memref<8x32xbf16, #tpu.memory_space<vmem>>, vector<8x32xbf16>
      tpu.vector_store %arg10[%c0_28, %c0_29], %27 {strides = array<i32>} : memref<8x32xbf16, #tpu.memory_space<vmem>>, vector<8x32xbf16>,
      %c0_30 = arith.constant 0 : index
      %c0_31 = arith.constant 0 : index
      %29 = vector.load %arg14[%c0_30, %c0_31] : memref<8x32xf32, #tpu.memory_space<vmem>>, vector<8x32xf32>
      %c0_32 = arith.constant 0 : index
      %c0_33 = arith.constant 0 : index
      %30 = vector.load %arg8[%c0_32, %c0_33] : memref<1x32xf32, #tpu.memory_space<vmem>>, vector<1x32xf32>
      %31 = vector.broadcast %30 : vector<1x32xf32> to vector<8x32xf32>
      %32 = arith.addf %29, %31 : vector<8x32xf32>
      %33 = arith.truncf %32 : vector<8x32xf32> to vector<8x32xbf16>
      %c0_34 = arith.constant 0 : index
      %c0_35 = arith.constant 0 : index
      %34 = vector.load %arg11[%c0_34, %c0_35] : memref<8x32xbf16, #tpu.memory_space<vmem>>, vector<8x32xbf16>
      tpu.vector_store %arg11[%c0_34, %c0_35], %33 {strides = array<i32>} : memref<8x32xbf16, #tpu.memory_space<vmem>>, vector<8x32xbf16>,
      %c0_36 = arith.constant 0 : index
      %c0_37 = arith.constant 0 : index
      %35 = vector.load %arg15[%c0_36, %c0_37] : memref<8x32xf32, #tpu.memory_space<vmem>>, vector<8x32xf32>
      %c0_38 = arith.constant 0 : index
      %c0_39 = arith.constant 0 : index
      %36 = vector.load %arg9[%c0_38, %c0_39] : memref<1x32xf32, #tpu.memory_space<vmem>>, vector<1x32xf32>
      %37 = vector.broadcast %36 : vector<1x32xf32> to vector<8x32xf32>
      %38 = arith.addf %35, %37 : vector<8x32xf32>
      %39 = arith.truncf %38 : vector<8x32xf32> to vector<8x32xbf16>
      %c0_40 = arith.constant 0 : index
      %c0_41 = arith.constant 0 : index
      %40 = vector.load %arg12[%c0_40, %c0_41] : memref<8x32xbf16, #tpu.memory_space<vmem>>, vector<8x32xbf16>
      tpu.vector_store %arg12[%c0_40, %c0_41], %39 {strides = array<i32>} : memref<8x32xbf16, #tpu.memory_space<vmem>>, vector<8x32xbf16>,
    } else {
    }
    return
  }
  func.func @transform_0(%arg0: i32, %arg1: i32, %arg2: i32) -> (i32, i32) {
    %c0_i32 = arith.constant 0 : i32
    return %arg0, %arg2 : i32, i32
  }
  func.func @transform_1(%arg0: i32, %arg1: i32, %arg2: i32) -> (i32, i32) {
    %c0_i32 = arith.constant 0 : i32
    return %arg2, %arg1 : i32, i32
  }
  func.func @transform_2(%arg0: i32, %arg1: i32, %arg2: i32) -> (i32, i32) {
    %c0_i32 = arith.constant 0 : i32
    return %arg2, %arg1 : i32, i32
  }
  func.func @transform_3(%arg0: i32, %arg1: i32, %arg2: i32) -> (i32, i32) {
    %c0_i32 = arith.constant 0 : i32
    return %arg2, %arg1 : i32, i32
  }
  func.func @transform_4(%arg0: i32, %arg1: i32, %arg2: i32) -> (i32, i32) {
    %c0_i32 = arith.constant 0 : i32
    %c0_i32_0 = arith.constant 0 : i32
    return %c0_i32, %arg1 : i32, i32
  }
  func.func @transform_5(%arg0: i32, %arg1: i32, %arg2: i32) -> (i32, i32) {
    %c0_i32 = arith.constant 0 : i32
    %c0_i32_0 = arith.constant 0 : i32
    return %c0_i32, %arg1 : i32, i32
  }
  func.func @transform_6(%arg0: i32, %arg1: i32, %arg2: i32) -> (i32, i32) {
    %c0_i32 = arith.constant 0 : i32
    %c0_i32_0 = arith.constant 0 : i32
    return %c0_i32, %arg1 : i32, i32
  }
  func.func @transform_7(%arg0: i32, %arg1: i32, %arg2: i32) -> (i32, i32) {
    %c0_i32 = arith.constant 0 : i32
    return %arg0, %arg1 : i32, i32
  }
  func.func @transform_8(%arg0: i32, %arg1: i32, %arg2: i32) -> (i32, i32) {
    %c0_i32 = arith.constant 0 : i32
    return %arg0, %arg1 : i32, i32
  }
  func.func @transform_9(%arg0: i32, %arg1: i32, %arg2: i32) -> (i32, i32) {
    %c0_i32 = arith.constant 0 : i32
    return %arg0, %arg1 : i32, i32
  }
}

</mosaic_0001>

<bundles_post_ra>
// kernel: tpu_custom_call.1
= control target key start
LH: loop header
LB: loop body
LE: loop exit
PB: predicated region body
PF: predicated region fallthrough
CT: control target
= control target key end

     0   :  { %s1921_s0 = inlined_call_operand.hbm [shape: f32[16,32], index: 0, kind: input, shape index: {}]   ;;  %s1922_s1 = inlined_call_operand.hbm [shape: bf16[32,32], index: 1, kind: input, shape index: {}]   ;;  %s1923_s2 = inlined_call_operand.hbm [shape: bf16[32,32], index: 2, kind: input, shape index: {}]   ;;  %s1924_s3 = inlined_call_operand.hbm [shape: bf16[32,32], index: 3, kind: input, shape index: {}]   ;;  %s1925_s4 = inlined_call_operand.vmem [shape: f32[1,32], index: 4, kind: input, shape index: {}]   ;;  %s1926_s5 = inlined_call_operand.vmem [shape: f32[1,32], index: 5, kind: input, shape index: {}]   ;;  %s1927_s6 = inlined_call_operand.vmem [shape: f32[1,32], index: 6, kind: input, shape index: {}]   ;;  %s1928_s7 = inlined_call_operand.hbm [shape: bf16[16,32], index: 7, kind: output, shape index: {0}]   ;;  %s1929_s8 = inlined_call_operand.hbm [shape: bf16[16,32], index: 8, kind: output, shape index: {1}]   ;;  %s1930_s9 = inlined_call_operand.hbm [shape: bf16[16,32], index: 9, kind: output, shape index: {2}]  }
   0x1   :  { %1940 = sst [smem:[#allocation24_spill]] %s1921_s0 }
   0x2   :  { %1941 = sst [smem:[#allocation25_spill]] %s1927_s6 }
   0x3   :  { %1942 = sst [smem:[#allocation26_spill]] %s1929_s8 }
   0x4   :  { %1943 = sst [smem:[#allocation27_spill]] %s1930_s9 }
   0x5   :  { %15 = vsyncpa [#allocation6], 0 }
   0x6   :  { %17 = vsyncpa [#allocation6 + $0x1], 0 }
   0x7   :  { %18 = vsyncpa [#allocation9], 0 }
   0x8   :  { %19 = vsyncpa [#allocation12], 0 }
   0x9   :  { %20 = vsyncpa [#allocation7], 0 }
   0xa   :  { %22 = vsyncpa [#allocation7 + $0x1], 0 }
   0xb   :  { %23 = vsyncpa [#allocation15], 0 }
   0xc   :  { %25 = vsyncpa [#allocation15 + $0x1], 0  ;;  %s1534_s30 = smov 0   ;;  %s1536_s10 = smov 0  }
   0xd   :  { %s1538_s11 = smov 0   ;;  %s1540_s12 = smov 0  }
   0xe   :  { %s1542_s13 = smov 0   ;;  %s1544_s14 = smov 0  }
   0xf LB: > { %1944 = sst [smem:[#allocation22_spill]] %s1451_s30  ;;  %s1565_s15 = sadd.s32 4294967295, %s1471_s14   ;;  %s1471_s14 = sphi %s1544_s14, %s31_s14   ;;  %s1467_s13 = sphi %s1542_s13, %s1975_s13   ;;  %s1463_s12 = sphi %s1540_s12, %s1974_s12   ;;  %s1459_s11 = sphi %s1538_s11, %s1973_s11   ;;  %s1455_s10 = sphi %s1536_s10, %s1972_s10   ;;  %s1451_s30 = sphi %s1534_s30, %s1971_s30  }
  0x10   : > { %s1931_s16 = sadd.s32 4294967294, %s1471_s14   ;;  %p72_p0 = scmp.ne.s32.totalorder %s1455_s10, %s1451_s30 }
  0x11   : > { %p1933_p1 = scmp.eq.s32.totalorder %s1565_s15, 0  ;;  %p266_p3 = scmp.eq.s32.totalorder %s1931_s16, 1 }
  0x12   : > { %p1023_p5 = scmp.ge.s32.totalorder %s1471_s14, 1  ;;  %p329_p7 = scmp.lt.s32.totalorder %s1471_s14, 3 }
  0x13   : > { %p1576_p4 = por %p1933_p1, %p72_p0  ;;  %p1581_p6 = por %p266_p3, %p72_p0 }
  0x14   : > { %p1586_p8 = pnand %p1023_p5, %p329_p7  ;;  %s1473_s20 = smov [#allocation8]  }
  0x15   : > { %s1945_s17 = scalar_select %p1576_p4, 1, 0 }
  0x16   : > { %s1946_s18 = scalar_select %p1581_p6, 1, 0 }
  0x17   : > { %s1948_s19 = scalar_select %p1586_p8, 1, 0 }
  0x18   : > { %1947 = sst [smem:[#allocation23_spill]] %s1946_s18  ;;  %s345_s21 = sshll.u32 %s1473_s20, 4  ;;  %s1590_s21 = int_to_ptr.vmem [resolvable:$true] %s345_s21 }
  0x19   : > { %p1114_p9 = pneg %p1586_p8  ;;  %s1474_s23 = smov [#allocation10]  }
  0x1a   : > { %s362_s24 = sshll.u32 %s1474_s23, 4  ;;  %s1475_s25 = smov [#allocation11]   ;;  %s1601_s24 = int_to_ptr.vmem [resolvable:$true] %s362_s24 }
  0x1b   : > { %p1597_p11 = pnand %p1114_p9, %p1933_p1  ;;  %s1603_s26 = sshll.u32 %s1475_s25, 4  ;;  %s380_s26 = int_to_ptr.vmem [resolvable:$true] %s1603_s26 }
  0x1c   : > { %s1207_s29 = scalar_lea.hbm %s1922_s1, 256 }
  0x1d   : > { %p1208_p12 = scmp.ne.s32.totalorder %s1922_s1, %s1207_s29  ;;  %p1613_p13 = pneg %p1597_p11 }
  0x1e   : > { %p1214_p5 = scmp.lt.u32.totalorder %s1207_s29, %s1922_s1 }
  0x1f   : > { %p1210_p0 = pnand %p1613_p13, %p1208_p12 }
  0x21   : > { %p1211_p3 = pneg %p1210_p0 }
  0x23   : > { %p1216_p7 = pnand %p1214_p5, %p1211_p3 }
  0x25   : > { %1219 = shalt.err (!%p1216_p7)
}
  0x26   : > { %s1220_s16 = scalar_lea.vmem %s1590_s21, 256  ;;  %p1228_p2 = scmp.lt.s32.totalorder %s1590_s21, %s1590_s21 }
  0x27   : > { %p1221_p9 = scmp.ne.s32.totalorder %s1590_s21, %s1220_s16  ;;  %p1229_p6 = scmp.lt.s32.totalorder %s1220_s16, %s1220_s16 }
  0x29   : > { %p1223_p10 = pnand %p1221_p9, %p1613_p13  ;;  %p1230_p12 = por %p1229_p6, %p1228_p2 }
  0x2b   : > { %p1224_p1 = pneg %p1223_p10 }
  0x2d   : > { %p1231_p0 = pnand %p1230_p12, %p1224_p1 }
  0x2f   : > { %1234 = shalt.err (!%p1231_p0)
}
  0x30   : > { %s1476_s27 = smov 64   ;;  %s1477_s28 = smov 4  }
  0x31   : > { %1117 = dma.hbm_to_vmem [thread:$0]  (!%p1597_p11), %s1922_s1, 256, %s1590_s21, [#allocation9], %s1476_s27, %s1476_s27, %s1477_s28  }
  0x32   : > { %s1235_s16 = scalar_lea.hbm %s1923_s2, 256 }
  0x33   : > { %p1236_p1 = scmp.ne.s32.totalorder %s1923_s2, %s1235_s16  ;;  %p1242_p10 = scmp.lt.u32.totalorder %s1235_s16, %s1923_s2 }
  0x35   : > { %p1238_p2 = pnand %p1236_p1, %p1613_p13 }
  0x37   : > { %p1239_p6 = pneg %p1238_p2 }
  0x39   : > { %p1244_p3 = pnand %p1242_p10, %p1239_p6 }
  0x3b   : > { %1247 = shalt.err (!%p1244_p3)
}
  0x3c   : > { %s1248_s21 = scalar_lea.vmem %s1601_s24, 256  ;;  %p1256_p12 = scmp.lt.s32.totalorder %s1601_s24, %s1601_s24 }
  0x3d   : > { %p1249_p5 = scmp.ne.s32.totalorder %s1601_s24, %s1248_s21  ;;  %p1257_p0 = scmp.lt.s32.totalorder %s1248_s21, %s1248_s21 }
  0x3f   : > { %p1251_p7 = pnand %p1249_p5, %p1613_p13  ;;  %p1258_p1 = por %p1257_p0, %p1256_p12 }
  0x41   : > { %p1252_p9 = pneg %p1251_p7 }
  0x43   : > { %p1259_p2 = pnand %p1258_p1, %p1252_p9 }
  0x45   : > { %1262 = shalt.err (!%p1259_p2)
}
  0x46   : > { %1120 = dma.hbm_to_vmem [thread:$0]  (!%p1597_p11), %s1923_s2, 256, %s1601_s24, [#allocation9], %s1476_s27, %s1476_s27, %s1477_s28  }
  0x47   : > { %s1263_s29 = scalar_lea.hbm %s1924_s3, 256 }
  0x48   : > { %p1264_p6 = scmp.ne.s32.totalorder %s1924_s3, %s1263_s29  ;;  %p1270_p5 = scmp.lt.u32.totalorder %s1263_s29, %s1924_s3 }
  0x4a   : > { %p1266_p10 = pnand %p1264_p6, %p1613_p13 }
  0x4c   : > { %p1267_p3 = pneg %p1266_p10 }
  0x4e   : > { %p1272_p7 = pnand %p1270_p5, %p1267_p3 }
  0x50   : > { %1275 = shalt.err (!%p1272_p7)
}
  0x51   : > { %s1276_s21 = scalar_lea.vmem %s380_s26, 256  ;;  %p1284_p1 = scmp.lt.s32.totalorder %s380_s26, %s380_s26 }
  0x52   : > { %p1277_p9 = scmp.ne.s32.totalorder %s380_s26, %s1276_s21  ;;  %p1285_p2 = scmp.lt.s32.totalorder %s1276_s21, %s1276_s21 }
  0x54   : > { %p1279_p12 = pnand %p1277_p9, %p1613_p13  ;;  %p1286_p4 = por %p1285_p2, %p1284_p1 }
  0x56   : > { %p1280_p0 = pneg %p1279_p12 }
  0x58   : > { %p1287_p8 = pnand %p1286_p4, %p1280_p0 }
  0x5a   : > { %1290 = shalt.err (!%p1287_p8)
}
  0x5b   : > { %1123 = dma.hbm_to_vmem [thread:$0]  (!%p1597_p11), %s1924_s3, 256, %s380_s26, [#allocation12], %s1476_s27, %s1476_s27, %s1477_s28  }
  0x5c   : > { %s59_s18 = sadd.s32 1, %s1459_s11  ;;  %s50_s22 = sadd.s32 1, %s1467_s13 }
  0x5d   : > { %p66_p4 = scmp.ne.s32.totalorder %s1459_s11, %s1455_s10  ;;  %p52_p8 = scmp.ge.s32.totalorder %s50_s22, 2 }
  0x5e   : > { %p67_p13 = scmp.eq.s32.totalorder %s1471_s14, 0  ;;  %p1951_p6 = scmp.eq.s32.totalorder %s1565_s15, 1 }
  0x5f   : > { %p1141_p3 = scmp.lt.s32.totalorder %s1471_s14, 2  ;;  %s1977_s22 = smov (%p52_p8, %s50_s22), 0 }
  0x60   : > { %p1692_p10 = por %p1951_p6, %p66_p4  ;;  %p68_p5 = por %p67_p13, %p66_p4 }
  0x61   : > { %s411_s9 = sand.u32 1, %s1459_s11   ;;  %s54_s30 = ssub.s32 %s1467_s13, %s1977_s22 }
  0x62   : > { %p57_p7 = scmp.eq.s32.totalorder %s54_s30, 0  ;;  %s1031_s26 = sshll.u32 %s411_s9, 3 }
  0x63   : > { %s1032_s27 = sshll.u32 %s1467_s13, 7  ;;  %s1953_s0 = sld [smem:[#allocation24_spill]] }
  0x64   : > { %s1704_s28 = scalar_select %p57_p7, %s1459_s11, %s59_s18  }
  0x65   : > { %s415_s25 = scalar_lea.vmem [#allocation5], %s1031_s26  ;;  %p1715_p11 = pnand %p1141_p3, %p68_p5 }
  0x66   : > { %s423_s16 = sshll.u32 %s415_s25, 4  ;;  %s412_s24 = scalar_lea.sflag [#allocation6], %s411_s9  ;;  %s1711_s16 = int_to_ptr.vmem [resolvable:$true] %s423_s16 }
  0x67   : > { %p1293_p12 = pneg %p1715_p11 }
  0x69   : > { %s1709_s23 = scalar_lea.hbm %s1953_s0, %s1032_s27  ;;  %s1296_s26 = scalar_lea.hbm %s1953_s0, 256 }
  0x6a   : > { %s1291_s6 = scalar_lea.hbm %s1709_s23, 128  ;;  %p1297_p2 = scmp.lt.u32.totalorder %s1709_s23, %s1953_s0 }
  0x6b   : > { %p1292_p9 = scmp.ne.s32.totalorder %s1709_s23, %s1291_s6  ;;  %p1298_p4 = scmp.lt.u32.totalorder %s1296_s26, %s1291_s6 }
  0x6c   : > { %p1300_p13 = scmp.lt.u32.totalorder %s1291_s6, %s1709_s23 }
  0x6d   : > { %p1294_p0 = pnand %p1293_p12, %p1292_p9  ;;  %p1299_p8 = por %p1298_p4, %p1297_p2 }
  0x6f   : > { %p1295_p1 = pneg %p1294_p0  ;;  %p1301_p6 = por %p1300_p13, %p1299_p8 }
  0x71   : > { %p1302_p3 = pnand %p1301_p6, %p1295_p1 }
  0x73   : > { %1305 = shalt.err (!%p1302_p3)
}
  0x74   : > { %s1306_s9 = scalar_lea.vmem %s1711_s16, 128  ;;  %s1478_s20 = smov [#allocation5]  }
  0x75   : > { %p1307_p5 = scmp.ne.s32.totalorder %s1711_s16, %s1306_s9  ;;  %s1311_s25 = sshll.u32 %s1478_s20, 4  ;;  %s1312_s25 = int_to_ptr.vmem [resolvable:$false] %s1311_s25 }
  0x76   : > { %s1313_s18 = scalar_lea.vmem %s1312_s25, 256  ;;  %p1314_p0 = scmp.lt.s32.totalorder %s1711_s16, %s1312_s25 }
  0x77   : > { %p1309_p7 = pnand %p1307_p5, %p1293_p12  ;;  %p1315_p2 = scmp.lt.s32.totalorder %s1313_s18, %s1306_s9 }
  0x79   : > { %p1310_p9 = pneg %p1309_p7  ;;  %p1316_p4 = por %p1315_p2, %p1314_p0 }
  0x7b   : > { %p1317_p8 = pnand %p1316_p4, %p1310_p9 }
  0x7d   : > { %1320 = shalt.err (!%p1317_p8)
}
  0x7e   : > { %1127 = dma.hbm_to_vmem [thread:$0]  (!%p1715_p11), %s1709_s23, 128, %s1711_s16, %s412_s24  }
  0x7f   : > { %p1955_p1 = scmp.ne.s32.totalorder %s1948_s19, 0 }
  0x80   : > { %s1747_s6 = sand.u32 (!%p1955_p1), 1, %s1455_s10   ;;  %p1956_p12 = scmp.ne.s32.totalorder (!%p1955_p1), %s1945_s17, 0 }
  0x81   : > { %432 = sbr.rel (%p1955_p1) target bundleno = 442 (0x1ba), region = 48  ;;  %s1034_s30 = sshll.u32 (!%p1955_p1), %s1747_s6, 3 }
  0x82   : > { %s435_s26 = scalar_lea.sflag (!%p1955_p1), [#allocation6], %s1747_s6  ;;  %s438_s27 = scalar_lea.vmem (!%p1955_p1), [#allocation5], %s1034_s30 }
  0x88   : > { %1430 = dma.done.wait (%p1956_p12), %s435_s26, 128  }
  0x89   : > { %1432 = vsyncadd (%p1956_p12), %s435_s26, 4294967168  ;;  %p1957_p13 = scmp.eq.s32.totalorder %s1565_s15, 0 }
  0x8b   : > { %1434 = dma.done.wait (%p1957_p13), [#allocation9], 512   ;;  %p1958_p11 = pmov %p1957_p13 }
  0x8d   : > { %1436 = vsyncadd (%p1958_p11), [#allocation9], 4294966784  ;;  %p1959_p6 = pmov %p1958_p11 }
  0x8f   : > { %1438 = dma.done.wait (%p1959_p6), [#allocation12], 256   ;;  %p1960_p3 = pmov %p1959_p6 }
  0x90   : > { %vm521_vm0 = vcmask 261120   ;;  %v1479_v0 = vmov 0.0   ;;  %vm1480_vm1 = vmmov 0   ;;  %v1201_v1 = vld [vmem:[#allocation8] sm:$0xff]   ;;  %v1202_v2 = vld [vmem:[#allocation8 + $0x8] sm:$0xff]   ;;  %v1203_v3 = vld [vmem:[#allocation10] sm:$0xff]  }
  0x91   : > { %1440 = vsyncadd (%p1960_p3), [#allocation12], 4294967040  ;;  %1070 = vmatprep.subr.bf16.mxu0 %v1479_v0  ;;  %1078 = vmatprep.subr.bf16.mxu1 %v1479_v0  ;;  %522 = vst.msk [vmem:[#allocation2] sm:$0xff] %vm521_vm0, %v1479_v0  ;;  %v525_v4 = vld [vmem:[%s438_s27] sm:$0xff]  ;;  %v1204_v7 = vld [vmem:[#allocation11] sm:$0xff]   ;;  %s1775_s17 = sshll.u32 %s1747_s6, 2 }
  0x92   : > { %523 = vst.msk [vmem:[#allocation3] sm:$0xff] %vm521_vm0, %v1479_v0  ;;  %524 = vst.msk [vmem:[#allocation4] sm:$0xff] %vm521_vm0, %v1479_v0  ;;  %1074 = vmatprep.mubr.msk.bf16.mxu0 %vm1480_vm1, %v1479_v0  ;;  %1082 = vmatprep.mubr.msk.bf16.mxu1 %vm1480_vm1, %v1479_v0  ;;  %v526_v5 = vpack.c.bf16 %v525_v4, %v525_v4  ;;  %v1205_v6 = vld [vmem:[#allocation10 + $0x8] sm:$0xff]   ;;  %v1206_v8 = vld [vmem:[#allocation11 + $0x8] sm:$0xff]   ;;  %s1784_s24 = sshll.u32 %s1463_s12, 6  ;;  %s489_s29 = scalar_lea.vmem [#allocation13], %s1775_s17 }
  0x93   : > { %1071 = vmatpush3.bf16.msra.mxu0 %v1201_v1  ;;  %1079 = vmatpush3.bf16.msra.mxu1 %v1203_v3  ;;  %v1050_v23 = vld [vmem:[%s1925_s4] ss:$0 sm:$0xff]  ;;  %s770_s9 = sshll.u32 %s489_s29, 4  ;;  %vm721_vm2 = vcmask 257024   ;;  %s1939_s25 = scalar_lea.vmem [#allocation14], %s1775_s17  ;;  %s1798_s9 = int_to_ptr.vmem [resolvable:$true] %s770_s9 }
  0x94   : > { %1072 = vmatprep.subr.bf16.mxu0 %v1479_v0  ;;  %1080 = vmatprep.subr.bf16.mxu1 %v1479_v0  ;;  %v1051_v27 = vld [vmem:[%s1926_s5] ss:$0 sm:$0xff]  ;;  %s784_s18 = sshll.u32 %s1939_s25, 4  ;;  %s1796_s26 = scalar_lea.hbm %s1928_s7, %s1784_s24  ;;  %s1806_s18 = int_to_ptr.vmem [resolvable:$true] %s784_s18 }
  0x95   : > { %s1961_s23 = sld [smem:[#allocation26_spill]]  ;;  %s746_s21 = scalar_lea.sflag [#allocation7], %s1747_s6 }
  0x96   : > { %s1321_s20 = scalar_lea.vmem %s1798_s9, 64  ;;  %s1481_s12 = smov [#allocation13]  }
  0x97   : > { %1073 = vmatpush3.bf16.msra.mxu0 %v1202_v2  ;;  %1081 = vmatpush3.bf16.msra.mxu1 %v1205_v6  ;;  %p1322_p5 = scmp.ne.s32.totalorder %s1798_s9, %s1321_s20  ;;  %s1325_s30 = sshll.u32 %s1481_s12, 4  ;;  %s1326_s30 = int_to_ptr.vmem [resolvable:$false] %s1325_s30 }
  0x98   : > { %1086 = vmatprep.subr.bf16.mxu0 %v1479_v0  ;;  %v527_v9 = vld [vmem:[#allocation2] sm:$0xff]  ;;  %s1327_s25 = scalar_lea.vmem %s1326_s30, 128  ;;  %p1328_p0 = scmp.lt.s32.totalorder %s1798_s9, %s1326_s30 }
  0x99   : > { %v590_v11 = vld [vmem:[#allocation3] sm:$0xff]  ;;  %v649_v21 = vld [vmem:[#allocation4] sm:$0xff]  ;;  %p1323_p7 = pnand %p1322_p5, %p1692_p10  ;;  %p1329_p2 = scmp.lt.s32.totalorder %s1327_s25, %s1321_s20 }
  0x9a   : > { %1075 = vmatmul.mubr.msk.bf16.vlgmr.msra.gmra.mrb[0].mxu0 %vm521_vm0, %v526_v5  ;;  %1083 = vmatmul.mubr.msk.bf16.vlgmr.msra.gmra.mrb[0].mxu1 %vm521_vm0, %v526_v5 }
  0x9b   : > { %1087 = vmatpush3.bf16.msra.mxu0 %v1204_v7  ;;  %1090 = vmatprep.mubr.msk.bf16.mxu0 %vm1480_vm1, %v1479_v0  ;;  %s1804_s16 = scalar_lea.hbm %s1961_s23, %s1784_s24  ;;  %p1324_p9 = pneg %p1323_p7 }
  0x9c   : > { %1088 = vmatprep.subr.bf16.mxu0 %v1479_v0  ;;  %p1330_p4 = por %p1329_p2, %p1328_p0 }
  0x9e   : > { %p1331_p8 = pnand %p1330_p4, %p1324_p9 }
  0x9f   : > { %1089 = vmatpush3.bf16.msra.mxu0 %v1206_v8 }
  0xa2   : > { %1091 = vmatmul.mubr.msk.bf16.vlgmr.msra.gmra.mrb[4].mxu0 %vm521_vm0, %v526_v5 }
 0x16d   : > { %v582_v10 = vpop.f32.mrb[0].mxu0  ;;  %v641_v15 = vpop.f32.mrb[0].mxu1 }
 0x16e   : > { %v588_v12 = vadd.f32 %v582_v10, %v527_v9  ;;  %v1076_v13 = vpop.f32.mrb[1].mxu0  ;;  %v647_v17 = vadd.f32 %v641_v15, %v590_v11  ;;  %v1084_v18 = vpop.f32.mrb[1].mxu1 }
 0x16f   : > { %v585_v14 = vpop.f32.mrb[2].mxu0  ;;  %v644_v19 = vpop.f32.mrb[2].mxu1 }
 0x170   : > { %589 = vst.msk [vmem:[#allocation2] sm:$0xff] %vm521_vm0, %v588_v12  ;;  %v1077_v16 = vpop.f32.mrb[3].mxu0  ;;  %648 = vst.msk [vmem:[#allocation3] sm:$0xff] %vm521_vm0, %v647_v17  ;;  %v1085_v20 = vpop.f32.mrb[3].mxu1 }
 0x175   : > { %v700_v22 = vpop.f32.mrb[4].mxu0 }
 0x176   : > { %v706_v24 = vadd.f32 %v700_v22, %v649_v21  ;;  %v1092_v25 = vpop.f32.mrb[5].mxu0 }
 0x177   : > { %v703_v26 = vpop.f32.mrb[6].mxu0  ;;  %v711_v28 = vld [vmem:[#allocation2] sm:$0xff]  ;;  %v723_v31 = vld [vmem:[#allocation3] sm:$0xff] }
 0x178   : > { %707 = vst.msk [vmem:[#allocation4] sm:$0xff] %vm521_vm0, %v706_v24  ;;  %v1093_v29 = vpop.f32.mrb[7].mxu0  ;;  %v719_v30 = vadd.f32 %v1050_v23, %v711_v28  ;;  %v731_v32 = vadd.f32 %v1051_v27, %v723_v31 }
 0x17a   : > { %v720_v33 = vpack.c.bf16 %v719_v30, %v719_v30  ;;  %v732_v34 = vpack.c.bf16 %v731_v32, %v731_v32 }
 0x17c   : > { %722 = vst.msk [vmem:[%s489_s29] sm:$0xf] %vm721_vm2, %v720_v33 }
 0x17d   : > { %1334 = shalt.err (!%p1331_p8)
}
 0x17e   : > { %s1335_s6 = scalar_lea.hbm %s1796_s26, 64  ;;  %s1339_s19 = scalar_lea.hbm %s1928_s7, 128 }
 0x17f   : > { %p1336_p1 = scmp.ne.s32.totalorder %s1796_s26, %s1335_s6  ;;  %p1340_p11 = scmp.lt.u32.totalorder %s1796_s26, %s1928_s7 }
 0x180   : > { %p1341_p6 = scmp.lt.u32.totalorder %s1339_s19, %s1335_s6  ;;  %p1343_p5 = scmp.lt.u32.totalorder %s1335_s6, %s1796_s26 }
 0x181   : > { %p1337_p12 = pnand %p1336_p1, %p1692_p10 }
 0x182   : > { %p1342_p3 = por %p1341_p6, %p1340_p11 }
 0x183   : > { %p1338_p13 = pneg %p1337_p12 }
 0x184   : > { %p1344_p7 = por %p1343_p5, %p1342_p3 }
 0x186   : > { %p1345_p9 = pnand %p1344_p7, %p1338_p13 }
 0x188   : > { %1348 = shalt.err (!%p1345_p9)
}
 0x189   : > { %1108 = dma.vmem_to_hbm [thread:$0]  (%p1692_p10), %s1798_s9, 64, %s1796_s26, %s746_s21  }
 0x18a   : > { %s1962_s29 = sld [smem:[#allocation25_spill]]  ;;  %s1963_s6 = scalar_lea.vmem [#allocation14], %s1775_s17 }
 0x18b   : > { %733 = vst.msk [vmem:[%s1963_s6] sm:$0xf] %vm721_vm2, %v732_v34  ;;  %s503_s27 = scalar_lea.vmem [#allocation16], %s1775_s17  ;;  %s1964_s12 = sand.u32 1, %s1565_s15  }
 0x18c   : > { %s1840_s19 = sshll.u32 %s503_s27, 4  ;;  %s1844_s30 = scalar_lea.sflag [#allocation15], %s1964_s12  ;;  %s799_s19 = int_to_ptr.vmem [resolvable:$true] %s1840_s19 }
 0x18d   : > { %s1349_s0 = scalar_lea.vmem %s1806_s18, 64  ;;  %s1482_s9 = smov [#allocation14]  }
 0x18e   : > { %p1350_p0 = scmp.ne.s32.totalorder %s1806_s18, %s1349_s0  ;;  %s1353_s26 = sshll.u32 %s1482_s9, 4  ;;  %s1354_s26 = int_to_ptr.vmem [resolvable:$false] %s1353_s26 }
 0x18f   : > { %s1355_s21 = scalar_lea.vmem %s1354_s26, 128  ;;  %p1356_p8 = scmp.lt.s32.totalorder %s1806_s18, %s1354_s26 }
 0x190   : > { %v1052_v35 = vld [vmem:[%s1962_s29] ss:$0 sm:$0xff]  ;;  %p1351_p2 = pnand %p1350_p0, %p1692_p10  ;;  %p1357_p1 = scmp.lt.s32.totalorder %s1355_s21, %s1349_s0 }
 0x192   : > { %p1352_p4 = pneg %p1351_p2  ;;  %p1358_p12 = por %p1357_p1, %p1356_p8 }
 0x194   : > { %p1359_p13 = pnand %p1358_p12, %p1352_p4 }
 0x196   : > { %1362 = shalt.err (!%p1359_p13)
}
 0x197   : > { %s1363_s15 = scalar_lea.hbm %s1804_s16, 64  ;;  %s1367_s29 = scalar_lea.hbm %s1961_s23, 128 }
 0x198   : > { %p1364_p11 = scmp.ne.s32.totalorder %s1804_s16, %s1363_s15  ;;  %p1368_p5 = scmp.lt.u32.totalorder %s1804_s16, %s1961_s23 }
 0x199   : > { %p1369_p7 = scmp.lt.u32.totalorder %s1367_s29, %s1363_s15  ;;  %p1371_p0 = scmp.lt.u32.totalorder %s1363_s15, %s1804_s16 }
 0x19a   : > { %p1365_p6 = pnand %p1364_p11, %p1692_p10 }
 0x19b   : > { %p1370_p9 = por %p1369_p7, %p1368_p5 }
 0x19c   : > { %p1366_p3 = pneg %p1365_p6 }
 0x19d   : > { %p1372_p2 = por %p1371_p0, %p1370_p9 }
 0x19f   : > { %p1373_p4 = pnand %p1372_p2, %p1366_p3 }
 0x1a1   : > { %1376 = shalt.err (!%p1373_p4)
}
 0x1a2   : > { %1109 = dma.vmem_to_hbm [thread:$0]  (%p1692_p10), %s1806_s18, 64, %s1804_s16, %s1844_s30   ;;  %v734_v36 = vld [vmem:[#allocation4] sm:$0xff] }
 0x1a3   : > { %v742_v37 = vadd.f32 %v1052_v35, %v734_v36  ;;  %s1965_s26 = sld [smem:[#allocation27_spill]]  ;;  %s1377_s15 = scalar_lea.vmem %s799_s19, 64 }
 0x1a4   : > { %p1378_p8 = scmp.ne.s32.totalorder %s799_s19, %s1377_s15  ;;  %s1483_s20 = smov [#allocation16]  }
 0x1a5   : > { %v743_v38 = vpack.c.bf16 %v742_v37, %v742_v37  ;;  %s1381_s25 = sshll.u32 %s1483_s20, 4  ;;  %s1382_s25 = int_to_ptr.vmem [resolvable:$false] %s1381_s25 }
 0x1a6   : > { %p1379_p1 = pnand %p1378_p8, %p1692_p10  ;;  %s1383_s18 = scalar_lea.vmem %s1382_s25, 128 }
 0x1a7   : > { %744 = vst.msk [vmem:[%s503_s27] sm:$0xf] %vm721_vm2, %v743_v38  ;;  %p1384_p13 = scmp.lt.s32.totalorder %s799_s19, %s1382_s25  ;;  %p1385_p11 = scmp.lt.s32.totalorder %s1383_s18, %s1377_s15 }
 0x1a8   : > { %p1380_p12 = pneg %p1379_p1 }
 0x1a9   : > { %s1872_s21 = scalar_lea.hbm %s1965_s26, %s1784_s24  ;;  %p1386_p6 = por %p1385_p11, %p1384_p13 }
 0x1ab   : > { %p1387_p3 = pnand %p1386_p6, %p1380_p12 }
 0x1ad   : > { %1390 = shalt.err (!%p1387_p3)
}
 0x1ae   : > { %s1391_s17 = scalar_lea.hbm %s1872_s21, 64  ;;  %s1395_s27 = scalar_lea.hbm %s1965_s26, 128 }
 0x1af   : > { %p1392_p5 = scmp.ne.s32.totalorder %s1872_s21, %s1391_s17  ;;  %p1396_p0 = scmp.lt.u32.totalorder %s1872_s21, %s1965_s26 }
 0x1b0   : > { %p1397_p2 = scmp.lt.u32.totalorder %s1395_s27, %s1391_s17  ;;  %p1399_p8 = scmp.lt.u32.totalorder %s1391_s17, %s1872_s21 }
 0x1b1   : > { %p1393_p7 = pnand %p1392_p5, %p1692_p10 }
 0x1b2   : > { %p1398_p4 = por %p1397_p2, %p1396_p0 }
 0x1b3   : > { %p1394_p9 = pneg %p1393_p7 }
 0x1b4   : > { %p1400_p1 = por %p1399_p8, %p1398_p4 }
 0x1b6   : > { %p1401_p12 = pnand %p1400_p1, %p1394_p9 }
 0x1b8   : > { %1404 = shalt.err (!%p1401_p12)
}
 0x1b9   : > { %1110 = dma.vmem_to_hbm [thread:$0]  (%p1692_p10), %s799_s19, 64, %s1872_s21, %s1844_s30  }
 0x1ba PF: > { %s1966_s12 = sld [smem:[#allocation22_spill]]  ;;  %s1967_s0 = sld [smem:[#allocation23_spill]] }
 0x1bb   : > { %p1969_p11 = scmp.ge.s32.totalorder %s1471_s14, 2 }
 0x1c0   : > { %s810_s9 = sand.u32 1, %s1966_s12   ;;  %p1968_p13 = scmp.ne.s32.totalorder %s1967_s0, 0 }
 0x1c1   : > { %s811_s15 = scalar_lea.sflag [#allocation7], %s810_s9 }
 0x1c2   : > { %p1129_p6 = pnand %p1969_p11, %p1968_p13 }
 0x1c4   : > { %1442 = dma.done.wait (!%p1129_p6), %s811_s15, 64  }
 0x1c5   : > { %1444 = vsyncadd (!%p1129_p6), %s811_s15, 4294967232  ;;  %s1970_s20 = sadd.s32 4294967294, %s1471_s14  }
 0x1c6   : > { %s819_s25 = sand.u32 1, %s1970_s20  }
 0x1c7   : > { %s820_s18 = scalar_lea.sflag [#allocation15], %s819_s25 }
 0x1c8   : > { %1446 = dma.done.wait (!%p1129_p6), %s820_s18, 128  }
 0x1c9   : > { %1448 = vsyncadd (!%p1129_p6), %s820_s18, 4294967168  ;;  %s31_s14 = sadd.s32 1, %s1471_s14   ;;  %s1971_s30 = smov %s1455_s10 }
 0x1ca   : > { %p28_p10 = scmp.ge.s32.totalorder %s31_s14, 4   ;;  %s1972_s10 = smov %s1459_s11 }
 0x1cb   : > { %s1973_s11 = smov %s1704_s28  ;;  %s1974_s12 = smov %s1467_s13 }
 0x1cc   : > { %s1975_s13 = smov %s1977_s22  ;;  %30 = sbr.rel (!%p28_p10) target bundleno = 15 (0xf), region = 157 }
 0x1d3   :  { %834 = vsyncpa [#allocation6], 1 }
 0x1d4   :  { %836 = vsyncpa [#allocation6 + $0x1], 1 }
 0x1d5   :  { %837 = vsyncpa [#allocation9], 1 }
 0x1d6   :  { %838 = vsyncpa [#allocation12], 1 }
 0x1d7   :  { %839 = vsyncpa [#allocation7], 1 }
 0x1d8   :  { %841 = vsyncpa [#allocation7 + $0x1], 1 }
 0x1d9   :  { %842 = vsyncpa [#allocation15], 1 }
 0x1da   :  { %844 = vsyncpa [#allocation15 + $0x1], 1 }

</bundles_post_ra>
